<compile_context>
chip_gen: v7x
topology: tpu7x:2x2x1
jax: 0.10.0
libtpu: 0.0.40
codegen_flags: <defaults>
</compile_context>

<pallas_src>
import functools

import jax
import jax.numpy as jnp
from jax import lax
from jax.experimental import pallas as pl
from jax.experimental.pallas import tpu as pltpu

_EPS = 1e-8  # nn.CosineSimilarity default eps


def _round_up(a, b):
    return (a + b - 1) // b * b


def _pick_tile(padded_dim, candidates):
    """Largest candidate that divides padded_dim (candidates end with the alignment)."""
    for c in candidates:
        if c <= padded_dim and padded_dim % c == 0:
            return c
    return padded_dim


# ----------------------------------------------------------------------------
# Pairwise (B1, H) x (B2, H) -> (B1, B2) kernel: tiled matmul + norm epilogue.
# ----------------------------------------------------------------------------
def _pairwise_kernel(x_ref, y_ref, xsq_ref, ysq_ref, o_ref, *, temp_sq, eps_temp_sq):
    k = pl.program_id(2)

    @pl.when(k == 0)
    def _init():
        o_ref[...] = jnp.zeros_like(o_ref)

    # Pure MXU accumulate: (tm, tk) . (tn, tk)^T -> (tm, tn), f32 accumulation
    # directly into the (resident) output tile.
    o_ref[...] += lax.dot_general(
        x_ref[...], y_ref[...],
        dimension_numbers=(((1,), (1,)), ((), ())),
        preferred_element_type=jnp.float32)

    @pl.when(k == pl.num_programs(2) - 1)
    def _finalize():
        # rsqrt(max(t^2 ||x||^2 ||y||^2, (eps t)^2)) == 1/(temp * max(||x|| ||y||, eps))
        nx = xsq_ref[...] * temp_sq                              # (tm, 1)
        ny = ysq_ref[...]                                        # (1, tn)
        scale = lax.rsqrt(jnp.maximum(nx * ny, eps_temp_sq))     # (tm, tn), EUP
        o_ref[...] = (o_ref[...] * scale).astype(o_ref.dtype)


def _pairwise_similarity(x2d, y2d, temp, *, use_bf16_matmul=True):
    """x2d: (B1, H), y2d: (B2, H) -> (B1, B2) cosine similarity / temp."""
    temp = float(temp)  # must be a static Python scalar (baked into the kernel)
    B1, H = x2d.shape
    B2, H2 = y2d.shape
    assert H == H2, (x2d.shape, y2d.shape)

    # Pad to lane/sublane-friendly sizes (tm mult of 8, tn/tk mult of 128).
    B1p = _round_up(B1, 8)
    B2p = _round_up(B2, 128)
    Hp = _round_up(H, 128)

    tm = _pick_tile(B1p, (512, 256, 128, 64, 32, 16, 8))
    tn = _pick_tile(B2p, (512, 256, 128))
    tk = _pick_tile(Hp, (1024, 512, 256, 128))

    # v7x megacore: make sure the parallel (i, j) grid has >= 2 tiles whenever
    # the problem is big enough, so both TensorCores get work.
    if (B1p // tm) * (B2p // tn) < 2:
        if B2p >= 256:
            tn = B2p // 2          # B2p in {256, 512} here -> tn stays 128-aligned
        elif B1p >= 16:
            tm = B1p // 2          # B1p is a power of two >= 16 here

    xp = x2d if (B1p, Hp) == (B1, H) else jnp.pad(x2d, ((0, B1p - B1), (0, Hp - H)))
    yp = y2d if (B2p, Hp) == (B2, H) else jnp.pad(y2d, ((0, B2p - B2), (0, Hp - H)))

    # Hoisted squared norms (fuse with the pad in XLA): O((B1+B2)*H) once,
    # instead of being recomputed inside every (i, j, k) tile.
    xp32 = xp.astype(jnp.float32)
    yp32 = yp.astype(jnp.float32)
    xsq = jnp.sum(xp32 * xp32, axis=-1, keepdims=True)        # (B1p, 1)
    ysq = jnp.sum(yp32 * yp32, axis=-1, keepdims=True).T      # (1, B2p)

    # bf16 operands for the MXU (f32 accumulation); norms stay f32 from above.
    if use_bf16_matmul and xp.dtype == jnp.float32:
        x_mxu = xp.astype(jnp.bfloat16)
        y_mxu = yp.astype(jnp.bfloat16)
    else:
        x_mxu = xp
        y_mxu = yp

    grid = (B1p // tm, B2p // tn, Hp // tk)
    gi, gj, gk = grid
    # Worst-case double-buffered working set (bf16 operands, f32 out tile):
    # 2*(tm*tk + tn*tk)*2B + 2*tm*tn*4B ~= 6 MiB at tm=tn=512, tk=1024 ->
    # comfortably under the 16 MiB v5e default scoped VMEM limit.

    kernel = functools.partial(
        _pairwise_kernel,
        temp_sq=temp ** 2,
        eps_temp_sq=(_EPS * temp) ** 2,
    )

    out = pl.pallas_call(
        kernel,
        out_shape=jax.ShapeDtypeStruct((B1p, B2p), jnp.float32),
        grid_spec=pltpu.PrefetchScalarGridSpec(
            num_scalar_prefetch=0,
            grid=grid,
            in_specs=[
                pl.BlockSpec((tm, tk), lambda i, j, k: (i, k)),
                pl.BlockSpec((tn, tk), lambda i, j, k: (j, k)),
                pl.BlockSpec((tm, 1), lambda i, j, k: (i, 0)),
                pl.BlockSpec((1, tn), lambda i, j, k: (0, j)),
            ],
            out_specs=pl.BlockSpec((tm, tn), lambda i, j, k: (i, j)),
        ),
        compiler_params=pltpu.CompilerParams(
            dimension_semantics=("parallel", "parallel", "arbitrary")),
        cost_estimate=pl.CostEstimate(
            flops=2 * B1p * B2p * Hp,
            transcendentals=B1p * B2p,
            bytes_accessed=int(
                gj * x_mxu.size * x_mxu.dtype.itemsize     # x re-streamed per j tile
                + gi * y_mxu.size * y_mxu.dtype.itemsize   # y re-streamed per i tile
                + B1p * B2p * 4                            # output
                + (B1p + B2p) * 4)),                       # hoisted norms
    )(x_mxu, y_mxu, xsq, ysq)

    return out[:B1, :B2]


# ----------------------------------------------------------------------------
# Row-wise fallback: same-shape (after broadcast) cosine similarity along dim -1,
# with the feature dim tiled so VMEM stays bounded for any H.
# ----------------------------------------------------------------------------
def _rowwise_kernel(x_ref, y_ref, o_ref, dot_ref, nx_ref, ny_ref,
                    *, temp_sq, eps_temp_sq):
    k = pl.program_id(1)

    @pl.when(k == 0)
    def _init():
        dot_ref[...] = jnp.zeros_like(dot_ref)
        nx_ref[...] = jnp.zeros_like(nx_ref)
        ny_ref[...] = jnp.zeros_like(ny_ref)

    x = x_ref[...].astype(jnp.float32)   # (tr, tk)
    y = y_ref[...].astype(jnp.float32)   # (tr, tk)
    dot_ref[...] += jnp.sum(x * y, axis=-1, keepdims=True)
    nx_ref[...] += jnp.sum(x * x, axis=-1, keepdims=True)
    ny_ref[...] += jnp.sum(y * y, axis=-1, keepdims=True)

    @pl.when(k == pl.num_programs(1) - 1)
    def _finalize():
        scale = lax.rsqrt(jnp.maximum(nx_ref[...] * ny_ref[...] * temp_sq,
                                      eps_temp_sq))
        o_ref[...] = (dot_ref[...] * scale).astype(o_ref.dtype)


def _rowwise_similarity(x2d, y2d, temp):
    """x2d, y2d: (N, H) -> (N,) cosine similarity / temp."""
    temp = float(temp)
    N, H = x2d.shape
    Np = _round_up(N, 8)
    Hp = _round_up(H, 128)
    tr = _pick_tile(Np, (128, 64, 32, 16, 8))
    tk = _pick_tile(Hp, (1024, 512, 256, 128))
    if (Np, Hp) != (N, H):
        x2d = jnp.pad(x2d, ((0, Np - N), (0, Hp - H)))
        y2d = jnp.pad(y2d, ((0, Np - N), (0, Hp - H)))

    kernel = functools.partial(
        _rowwise_kernel,
        temp_sq=temp ** 2,
        eps_temp_sq=(_EPS * temp) ** 2,
    )
    out = pl.pallas_call(
        kernel,
        out_shape=jax.ShapeDtypeStruct((Np, 1), jnp.float32),
        grid_spec=pltpu.PrefetchScalarGridSpec(
            num_scalar_prefetch=0,
            grid=(Np // tr, Hp // tk),
            in_specs=[
                pl.BlockSpec((tr, tk), lambda i, k: (i, k)),
                pl.BlockSpec((tr, tk), lambda i, k: (i, k)),
            ],
            out_specs=pl.BlockSpec((tr, 1), lambda i, k: (i, 0)),
            scratch_shapes=[
                pltpu.VMEM((tr, 1), jnp.float32),   # dot accumulator
                pltpu.VMEM((tr, 1), jnp.float32),   # sum(x^2)
                pltpu.VMEM((tr, 1), jnp.float32),   # sum(y^2)
            ],
        ),
        compiler_params=pltpu.CompilerParams(
            dimension_semantics=("parallel", "arbitrary")),
    )(x2d, y2d)
    return out[:N, 0]


# ----------------------------------------------------------------------------
# Public wrapper matching Similarity.forward semantics.
# ----------------------------------------------------------------------------
def similarity(x, y, temp):
    """F.cosine_similarity(x, y, dim=-1) / temp.

    SimCSE pattern x: (B1, 1, H), y: (1, B2, H) -> (B1, B2) (tiled MXU kernel).
    Any other broadcastable pair -> row-wise reduction kernel on the broadcast shape.
    """
    x = jnp.asarray(x)
    y = jnp.asarray(y)

    pairwise = (x.ndim == 3 and y.ndim == 3
                and x.shape[1] == 1 and y.shape[0] == 1
                and x.shape[-1] == y.shape[-1])
    if pairwise:
        return _pairwise_similarity(x[:, 0, :], y[0, :, :], temp)

    xb, yb = jnp.broadcast_arrays(x, y)
    batch_shape = xb.shape[:-1]
    H = xb.shape[-1]
    n = 1
    for d in batch_shape:
        n *= d
    out = _rowwise_similarity(xb.reshape(n, H), yb.reshape(n, H), temp)
    return out.reshape(batch_shape)


def _reference(x, y, temp):
    # Pure-JAX reference matching F.cosine_similarity(x, y, dim=-1) / temp
    # (PyTorch clamps the *product* of norms with eps).
    xb, yb = jnp.broadcast_arrays(x.astype(jnp.float32), y.astype(jnp.float32))
    num = jnp.sum(xb * yb, axis=-1)
    den = jnp.maximum(jnp.linalg.norm(xb, axis=-1) * jnp.linalg.norm(yb, axis=-1),
                      _EPS)
    return num / den / temp


if __name__ == "__main__":
    temp = 0.05  # Similarity.__init__(temp) — the only "parameter"
    B, H = 8, 32

    key = jax.random.PRNGKey(0)
    kx, ky = jax.random.split(key)

    # SimCSE usage: z1.unsqueeze(1) vs z2.unsqueeze(0) -> (B, B) similarity matrix.
    x = jax.random.normal(kx, (B, 1, H), dtype=jnp.float32)
    y = jax.random.normal(ky, (1, B, H), dtype=jnp.float32)

    out = jax.block_until_ready(similarity(x, y, temp))
    ref = _reference(x, y, temp)
    assert out.shape == (B, B), out.shape
    assert jnp.allclose(out, ref, atol=2e-2, rtol=1e-2), (
        float(jnp.max(jnp.abs(out - ref))))

    # Row-wise (same-shape) path.
    x2 = jax.random.normal(kx, (4, H), dtype=jnp.float32)
    y2 = jax.random.normal(ky, (4, H), dtype=jnp.float32)
    out2 = jax.block_until_ready(similarity(x2, y2, temp))
    ref2 = _reference(x2, y2, temp)
    assert out2.shape == (4,), out2.shape
    assert jnp.allclose(out2, ref2, atol=2e-2, rtol=1e-2), (
        float(jnp.max(jnp.abs(out2 - ref2))))

    print("KERNEL_OK")
</pallas_src>

<mosaic_0001>
module attributes {stable_mosaic.version = 11 : i64} {
  func.func @_pairwise_kernel(%arg0: i32, %arg1: i32, %arg2: i32, %arg3: memref<8x128xbf16, #tpu.memory_space<vmem>>, %arg4: memref<128x128xbf16, #tpu.memory_space<vmem>>, %arg5: memref<8x1xf32, #tpu.memory_space<vmem>>, %arg6: memref<1x128xf32, #tpu.memory_space<vmem>>, %arg7: memref<8x128xf32, #tpu.memory_space<vmem>>) attributes {dimension_semantics = [#tpu.dimension_semantics<parallel>, #tpu.dimension_semantics<parallel>, #tpu.dimension_semantics<arbitrary>], iteration_bounds = array<i64: 1, 1, 1>, scalar_prefetch = 0 : i64, scratch_operands = 0 : i64, tpu.core_type = #tpu.core_type<tc>, window_params = [{transform_indices = @transform_0, window_bounds = array<i64: 8, 128>}, {transform_indices = @transform_1, window_bounds = array<i64: 128, 128>}, {transform_indices = @transform_2, window_bounds = array<i64: 8, 1>}, {transform_indices = @transform_3, window_bounds = array<i64: 1, 128>}, {transform_indices = @transform_4, window_bounds = array<i64: 8, 128>}]} {
    %c0_i32 = arith.constant 0 : i32
    %0 = arith.cmpi eq, %arg2, %c0_i32 : i32
    %1 = arith.extui %0 : i1 to i32
    %c0_i32_0 = arith.constant 0 : i32
    %2 = arith.cmpi ne, %1, %c0_i32_0 : i32
    scf.if %2 {
      %cst_10 = arith.constant 0.000000e+00 : f32
      %12 = vector.broadcast %cst_10 : f32 to vector<8x128xf32>
      %c0_11 = arith.constant 0 : index
      %c0_12 = arith.constant 0 : index
      %13 = vector.load %arg7[%c0_11, %c0_12] : memref<8x128xf32, #tpu.memory_space<vmem>>, vector<8x128xf32>
      tpu.vector_store %arg7[%c0_11, %c0_12], %12 {strides = array<i32>} : memref<8x128xf32, #tpu.memory_space<vmem>>, vector<8x128xf32>,
    } else {
    }
    %c0 = arith.constant 0 : index
    %c0_1 = arith.constant 0 : index
    %3 = vector.load %arg7[%c0, %c0_1] : memref<8x128xf32, #tpu.memory_space<vmem>>, vector<8x128xf32>
    %c0_2 = arith.constant 0 : index
    %c0_3 = arith.constant 0 : index
    %4 = vector.load %arg3[%c0_2, %c0_3] : memref<8x128xbf16, #tpu.memory_space<vmem>>, vector<8x128xbf16>
    %c0_4 = arith.constant 0 : index
    %c0_5 = arith.constant 0 : index
    %5 = vector.load %arg4[%c0_4, %c0_5] : memref<128x128xbf16, #tpu.memory_space<vmem>>, vector<128x128xbf16>
    %cst = arith.constant dense<0.000000e+00> : vector<8x128xf32>
    %6 = tpu.matmul %4, %5, %cst {dimension_numbers = #tpu.dot_dimension_numbers<[1], [1], [0], [0], [0, 0, 1, 0], [], []>} : vector<8x128xbf16>, vector<128x128xbf16>, vector<8x128xf32> -> vector<8x128xf32>
    %7 = arith.addf %3, %6 : vector<8x128xf32>
    %c0_6 = arith.constant 0 : index
    %c0_7 = arith.constant 0 : index
    %8 = vector.load %arg7[%c0_6, %c0_7] : memref<8x128xf32, #tpu.memory_space<vmem>>, vector<8x128xf32>
    tpu.vector_store %arg7[%c0_6, %c0_7], %7 {strides = array<i32>} : memref<8x128xf32, #tpu.memory_space<vmem>>, vector<8x128xf32>,
    %c0_i32_8 = arith.constant 0 : i32
    %9 = arith.cmpi eq, %arg2, %c0_i32_8 : i32
    %10 = arith.extui %9 : i1 to i32
    %c0_i32_9 = arith.constant 0 : i32
    %11 = arith.cmpi ne, %10, %c0_i32_9 : i32
    scf.if %11 {
      %c0_10 = arith.constant 0 : index
      %c0_11 = arith.constant 0 : index
      %12 = vector.load %arg5[%c0_10, %c0_11] : memref<8x1xf32, #tpu.memory_space<vmem>>, vector<8x1xf32>
      %cst_12 = arith.constant 2.500000e-03 : f32
      %13 = vector.broadcast %cst_12 : f32 to vector<8x1xf32>
      %14 = arith.mulf %12, %13 : vector<8x1xf32>
      %c0_13 = arith.constant 0 : index
      %c0_14 = arith.constant 0 : index
      %15 = vector.load %arg6[%c0_13, %c0_14] : memref<1x128xf32, #tpu.memory_space<vmem>>, vector<1x128xf32>
      %16 = vector.broadcast %14 : vector<8x1xf32> to vector<8x128xf32>
      %17 = vector.broadcast %15 : vector<1x128xf32> to vector<8x128xf32>
      %18 = arith.mulf %16, %17 : vector<8x128xf32>
      %cst_15 = arith.constant 2.500000e-19 : f32
      %19 = vector.broadcast %cst_15 : f32 to vector<8x128xf32>
      %20 = arith.maximumf %18, %19 : vector<8x128xf32>
      %21 = math.rsqrt %20 : vector<8x128xf32>
      %c0_16 = arith.constant 0 : index
      %c0_17 = arith.constant 0 : index
      %22 = vector.load %arg7[%c0_16, %c0_17] : memref<8x128xf32, #tpu.memory_space<vmem>>, vector<8x128xf32>
      %23 = arith.mulf %22, %21 : vector<8x128xf32>
      %c0_18 = arith.constant 0 : index
      %c0_19 = arith.constant 0 : index
      %24 = vector.load %arg7[%c0_18, %c0_19] : memref<8x128xf32, #tpu.memory_space<vmem>>, vector<8x128xf32>
      tpu.vector_store %arg7[%c0_18, %c0_19], %23 {strides = array<i32>} : memref<8x128xf32, #tpu.memory_space<vmem>>, vector<8x128xf32>,
    } else {
    }
    return
  }
  func.func @transform_0(%arg0: i32, %arg1: i32, %arg2: i32) -> (i32, i32) {
    %c0_i32 = arith.constant 0 : i32
    return %arg0, %arg2 : i32, i32
  }
  func.func @transform_1(%arg0: i32, %arg1: i32, %arg2: i32) -> (i32, i32) {
    %c0_i32 = arith.constant 0 : i32
    return %arg1, %arg2 : i32, i32
  }
  func.func @transform_2(%arg0: i32, %arg1: i32, %arg2: i32) -> (i32, i32) {
    %c0_i32 = arith.constant 0 : i32
    %c0_i32_0 = arith.constant 0 : i32
    return %arg0, %c0_i32 : i32, i32
  }
  func.func @transform_3(%arg0: i32, %arg1: i32, %arg2: i32) -> (i32, i32) {
    %c0_i32 = arith.constant 0 : i32
    %c0_i32_0 = arith.constant 0 : i32
    return %c0_i32, %arg1 : i32, i32
  }
  func.func @transform_4(%arg0: i32, %arg1: i32, %arg2: i32) -> (i32, i32) {
    %c0_i32 = arith.constant 0 : i32
    return %arg0, %arg1 : i32, i32
  }
}

</mosaic_0001>

<bundles_post_ra>
// kernel: tpu_custom_call.1
= control target key start
LH: loop header
LB: loop body
LE: loop exit
PB: predicated region body
PF: predicated region fallthrough
CT: control target
= control target key end

     0   :  { %9 = vsyncpa [#allocation3], 0  ;;  %s353_s0 = inlined_call_operand.vmem [shape: bf16[8,128], index: 0, kind: input, shape index: {}]   ;;  %s354_s1 = inlined_call_operand.hbm [shape: bf16[128,128], index: 1, kind: input, shape index: {}]   ;;  %s355_s2 = inlined_call_operand.vmem [shape: f32[8,1], index: 2, kind: input, shape index: {}]   ;;  %s356_s3 = inlined_call_operand.vmem [shape: f32[1,128], index: 3, kind: input, shape index: {}]   ;;  %s357_s4 = inlined_call_operand.hbm [shape: f32[8,128], index: 4, kind: output, shape index: {}]  }
   0x1   :  { %10 = vsyncpa [#allocation4], 0  ;;  %s288_s15 = smov [#allocation2]   ;;  %s240_s19 = scalar_lea.hbm %s354_s1, 1024 }
   0x2   :  { %s18_s16 = sshll.u32 %s288_s15, 4  ;;  %p241_p0 = scmp.ne.s32.totalorder %s354_s1, %s240_s19  ;;  %s19_s16 = int_to_ptr.vmem [resolvable:$true] %s18_s16 }
   0x3   :  { %p244_p1 = scmp.lt.u32.totalorder %s240_s19, %s354_s1 }
   0x5   :  { %p246_p2 = pnand %p244_p1, %p241_p0 }
   0x7   :  { %249 = shalt.err (!%p246_p2)
}
   0x8   :  { %s250_s24 = scalar_lea.vmem %s19_s16, 1024  ;;  %p255_p4 = scmp.lt.s32.totalorder %s19_s16, %s19_s16 }
   0x9   :  { %p251_p3 = scmp.ne.s32.totalorder %s19_s16, %s250_s24  ;;  %p256_p5 = scmp.lt.s32.totalorder %s250_s24, %s250_s24 }
   0xb   :  { %p257_p6 = por %p256_p5, %p255_p4 }
   0xd   :  { %p258_p7 = pnand %p257_p6, %p251_p3 }
   0xf   :  { %261 = shalt.err (!%p258_p7)
}
  0x10   :  { %s289_s25 = smov 64   ;;  %s290_s26 = smov 4  }
  0x11   :  { %24 = dma.hbm_to_vmem [thread:$0]  %s354_s1, 1024, %s19_s16, [#allocation3], %s289_s25, %s289_s25, %s290_s26  }
  0x12   :  { %284 = dma.done.wait [#allocation3], 1024  }
  0x13   :  { %285 = vsyncadd [#allocation3], 4294966272  ;;  %v291_v0 = vmov 0.0   ;;  %vm292_vm0 = vmmov 0   ;;  %v293_v1 = vmov 0   ;;  %v230_v2 = vld [vmem:[#allocation2] sm:$0xff]  }
  0x14   :  { %202 = vmatprep.subr.bf16.mxu0 %v291_v0  ;;  %218 = vmatprep.mubr.msk.bf16.mxu0 %vm292_vm0, %v291_v0  ;;  %v231_v3 = vld [vmem:[#allocation2 + $0x8] sm:$0xff]   ;;  %v149_v4 = vld [vmem:[%s355_s2] sm:$0xff]  ;;  %v232_v6 = vld [vmem:[#allocation2 + $0x10] sm:$0xff]   ;;  %s294_s7 = smov [#allocation5]  }
  0x15   :  { %229 = vset.pattern.permute.xlu0 %v293_v1  ;;  %203 = vmatpush3.bf16.xpose.msra.mxu0 %v230_v2  ;;  %v150_v5 = vmul.f32 0.0025, %v149_v4  ;;  %v233_v7 = vld [vmem:[#allocation2 + $0x18] sm:$0xff]   ;;  %v234_v8 = vld [vmem:[#allocation2 + $0x20] sm:$0xff]   ;;  %v235_v9 = vld [vmem:[#allocation2 + $0x28] sm:$0xff]   ;;  %s175_s8 = sshll.u32 %s294_s7, 4  ;;  %s176_s8 = int_to_ptr.vmem [resolvable:$true] %s175_s8 }
  0x16   :  { %204 = vmatprep.subr.bf16.mxu0 %v291_v0  ;;  %v236_v10 = vld [vmem:[#allocation2 + $0x30] sm:$0xff]   ;;  %v237_v11 = vld [vmem:[#allocation2 + $0x38] sm:$0xff]   ;;  %v39_v12 = vld [vmem:[%s353_s0] sm:$0xf]  ;;  %s262_s0 = scalar_lea.vmem %s176_s8, 128  ;;  %p267_p9 = scmp.lt.s32.totalorder %s176_s8, %s176_s8 }
  0x17   :  { %154 = vperm.xlu0 %229, %v150_v5   ;;  %v192_v13 = vld [vmem:[%s356_s3] ss:$0 sm:$0xff]  ;;  %p263_p8 = scmp.ne.s32.totalorder %s176_s8, %s262_s0  ;;  %p268_p10 = scmp.lt.s32.totalorder %s262_s0, %s262_s0 }
  0x19   :  { %p269_p11 = por %p268_p10, %p267_p9 }
  0x1b   :  { %p270_p12 = pnand %p269_p11, %p263_p8 }
  0x1d   :  { %205 = vmatpush3.bf16.xpose.msra.mxu0 %v231_v3 }
  0x1e   :  { %206 = vmatprep.subr.bf16.mxu0 %v291_v0 }
  0x25   :  { %207 = vmatpush3.bf16.xpose.msra.mxu0 %v232_v6 }
  0x26   :  { %208 = vmatprep.subr.bf16.mxu0 %v291_v0 }
  0x2d   :  { %209 = vmatpush3.bf16.xpose.msra.mxu0 %v233_v7 }
  0x2e   :  { %210 = vmatprep.subr.bf16.mxu0 %v291_v0 }
  0x35   :  { %211 = vmatpush3.bf16.xpose.msra.mxu0 %v234_v8 }
  0x36   :  { %212 = vmatprep.subr.bf16.mxu0 %v291_v0 }
  0x3d   :  { %213 = vmatpush3.bf16.xpose.msra.mxu0 %v235_v9 }
  0x3e   :  { %214 = vmatprep.subr.bf16.mxu0 %v291_v0 }
  0x45   :  { %215 = vmatpush3.bf16.xpose.msra.mxu0 %v236_v10 }
  0x46   :  { %216 = vmatprep.subr.bf16.mxu0 %v291_v0 }
  0x4d   :  { %217 = vmatpush3.bf16.xpose.msra.mxu0 %v237_v11 }
  0x54   :  { %219 = vmatmul.mubr.bf16.vlgmr.msra.gmra.mrb[0].mxu0 %v39_v12 }
  0x96   :  { %v155_v14 = vpop.permute.xlu0 %154 }
  0x97   :  { %v163_v15 = vmul.f32 %v192_v13, %v155_v14 }
  0x99   :  { %v164_v16 = vmax.f32 %v163_v15, 2.5e-19 }
  0x9b   :  { %238 = vrsqrt.f32 %v164_v16 }
  0xa5   :  { %v239_v17 = vpop.eup %238 }
 0x127   :  { %v138_v18 = vpop.f32.mrb[0].mxu0 }
 0x128   :  { %v220_v19 = vpop.f32.mrb[1].mxu0  ;;  %v167_v22 = vmul.f32 %v239_v17, %v138_v18 }
 0x129   :  { %v141_v20 = vpop.f32.mrb[2].mxu0 }
 0x12a   :  { %v221_v21 = vpop.f32.mrb[3].mxu0  ;;  %168 = vst [vmem:[#allocation5] sm:$0xff] %v167_v22 }
 0x12b   :  { %273 = shalt.err (!%p270_p12)
}
 0x12c   :  { %s274_s10 = scalar_lea.hbm %s357_s4, 128 }
 0x12d   :  { %p275_p13 = scmp.ne.s32.totalorder %s357_s4, %s274_s10  ;;  %p278_p0 = scmp.lt.u32.totalorder %s274_s10, %s357_s4 }
 0x12f   :  { %p280_p1 = pnand %p278_p0, %p275_p13 }
 0x131   :  { %283 = shalt.err (!%p280_p1)
}
 0x132   :  { %178 = dma.vmem_to_hbm [thread:$0]  %s176_s8, 128, %s357_s4, [#allocation4]  }
 0x133   :  { %286 = dma.done.wait [#allocation4], 128  }
 0x134   :  { %287 = vsyncadd [#allocation4], 4294967168 }
 0x135   :  { %182 = vsyncpa [#allocation3], 1 }
 0x136   :  { %183 = vsyncpa [#allocation4], 1 }

</bundles_post_ra>
